<compile_context>
chip_gen: v6e
topology: v6e:2x2x1
jax: 0.10.0
libtpu: 0.0.40
codegen_flags: <defaults>
</compile_context>

<pallas_src>
import jax
import jax.numpy as jnp
from jax.experimental import pallas as pl
from jax.experimental.pallas import tpu as pltpu

CLASS_NUM = 19

_SMALL_BYTES = 8 * 1024 * 1024    # below this total traffic: gridless VMEM path
_BLOCK_BYTES = 1 * 1024 * 1024    # per-operand block budget (3 ops x 2 bufs = 6 MiB)
_MIN_STEPS = 8                    # >= 4 grid steps per TensorCore on v7x megacore


def _proto_update_kernel(proto_aug_ref, stylized_ref, proto_out_ref):
    # Elementwise product on the VPU.  Multiply in f32 (no bf16 VALU on v5e),
    # write back in the output dtype so bf16 callers keep bf16 HBM traffic.
    x = proto_aug_ref[...].astype(jnp.float32)
    s = stylized_ref[...].astype(jnp.float32)
    proto_out_ref[...] = (x * s).astype(proto_out_ref.dtype)


def _lane_dense_slab(c, f):
    """Row-major reshape target (c, f) -> (rows, lane) that removes sublane pad."""
    n = c * f
    for lane in (1024, 512, 256, 128):
        if n % lane == 0:
            return n // lane, lane
    return None


def _round_down(x, m):
    return max(m, (x // m) * m)


def prototype_pixel_aug_dist_estimator_forward(proto_aug, stylized_matrix,
                                               in_place=False):
    """Pallas equivalent of the module's forward pass.

    Args:
      proto_aug:        (class_num, feature_num) array (any float dtype)
      stylized_matrix:  (class_num, feature_num) array (the module buffer)
      in_place:         if True and dtypes match, alias proto_aug's buffer for
                        the output (mirrors the module's in-place update of
                        self.Proto; caller must not reuse proto_aug afterwards).
    Returns:
      Proto:            (class_num, feature_num) array, dtype == proto_aug.dtype
    """
    assert proto_aug.shape == stylized_matrix.shape
    c, f = proto_aug.shape
    out_dtype = proto_aug.dtype          # keep Proto's dtype; no forced f32 upcast
    n = c * f
    out_itemsize = jnp.dtype(out_dtype).itemsize
    bytes_accessed = (n * jnp.dtype(proto_aug.dtype).itemsize
                      + n * jnp.dtype(stylized_matrix.dtype).itemsize
                      + n * out_itemsize)
    cost = pl.CostEstimate(flops=n, transcendentals=0,
                           bytes_accessed=bytes_accessed)

    # Lane-dense, sublane-friendly view when possible (kills the 19->24 pad and
    # the masked vst on the last sublane group of every store).
    slab = _lane_dense_slab(c, f)
    if slab is not None:
        rows, lane = slab
        a = proto_aug.reshape(rows, lane)
        b = stylized_matrix.reshape(rows, lane)
    else:
        rows, lane = c, f
        a, b = proto_aug, stylized_matrix

    aliases = {0: 0} if (in_place and a.dtype == out_dtype) else {}
    out_shape = jax.ShapeDtypeStruct((rows, lane), out_dtype)

    if bytes_accessed < _SMALL_BYTES:
        # Small problem: whole-array VMEM blocks, no grid, no pipeline
        # bookkeeping (at (19, 256) the whole thing is a handful of vregs).
        out = pl.pallas_call(
            _proto_update_kernel,
            out_shape=out_shape,
            in_specs=[pl.BlockSpec(memory_space=pltpu.MemorySpace.VMEM),
                      pl.BlockSpec(memory_space=pltpu.MemorySpace.VMEM)],
            out_specs=pl.BlockSpec(memory_space=pltpu.MemorySpace.VMEM),
            input_output_aliases=aliases,
            cost_estimate=cost,
        )(a, b)
        return out.reshape(c, f)

    # Large problem: cdiv-tiled grid — robust to any feature_num (ragged last
    # block is masked by Pallas), blocks sized so 3 operands x 2 pipeline
    # buffers stay well under every chip's scoped-VMEM default (incl. v5e's
    # 16 MiB), and enough steps that both v7x TensorCores get pipelining.
    if slab is not None:
        tile_r = _round_down(min(_BLOCK_BYTES // (lane * out_itemsize),
                                 pl.cdiv(rows, _MIN_STEPS)), 8)
        grid = (pl.cdiv(rows, tile_r),)
        in_specs = [pl.BlockSpec((tile_r, lane), lambda i: (i, 0)),
                    pl.BlockSpec((tile_r, lane), lambda i: (i, 0))]
        out_specs = pl.BlockSpec((tile_r, lane), lambda i: (i, 0))
    else:
        # feature_num not reshapeable: keep full class dim (== full extent, so
        # the (8,128) rule is satisfied) and tile the lane axis.
        tile_f = _round_down(min(_BLOCK_BYTES // (c * out_itemsize),
                                 pl.cdiv(f, _MIN_STEPS)), 128)
        grid = (pl.cdiv(f, tile_f),)
        in_specs = [pl.BlockSpec((c, tile_f), lambda j: (0, j)),
                    pl.BlockSpec((c, tile_f), lambda j: (0, j))]
        out_specs = pl.BlockSpec((c, tile_f), lambda j: (0, j))

    out = pl.pallas_call(
        _proto_update_kernel,
        out_shape=out_shape,
        grid=grid,
        in_specs=in_specs,
        out_specs=out_specs,
        input_output_aliases=aliases,
        cost_estimate=cost,
        compiler_params=pltpu.CompilerParams(
            # "parallel": lets v7x's two TensorCores split iterations; measured
            # neutral on single-TC v5e/v6e.
            dimension_semantics=("parallel",)),
    )(a, b)
    return out.reshape(c, f)


if __name__ == "__main__":
    feature_num = 256  # small, lane-aligned choice consistent with the module

    key = jax.random.PRNGKey(0)
    k_style, k_proto = jax.random.split(key)

    # Deterministic "parameter" init: stylized_matrix ~ U[0,1), like torch.rand
    stylized_matrix = jax.random.uniform(
        k_style, (CLASS_NUM, feature_num), dtype=jnp.float32
    )
    # Example forward input (proto_aug)
    proto_aug = jax.random.normal(
        k_proto, (CLASS_NUM, feature_num), dtype=jnp.float32
    )

    # Reference (computed before the kernel call; safe even with in_place=True).
    ref = proto_aug.astype(jnp.float32) * stylized_matrix.astype(jnp.float32)

    proto = prototype_pixel_aug_dist_estimator_forward(proto_aug, stylized_matrix)
    proto = jax.block_until_ready(proto)

    assert proto.shape == (CLASS_NUM, feature_num)
    assert proto.dtype == proto_aug.dtype
    assert jnp.allclose(proto.astype(jnp.float32), ref, atol=1e-6, rtol=1e-6)

    # TODO(synk): self.Amount / save() / init_feats loading are stateful
    # bookkeeping with no compute and are intentionally not kernelized.
    print("KERNEL_OK")
</pallas_src>

<mosaic_0001>
module attributes {stable_mosaic.version = 11 : i64} {
  func.func @_proto_update_kernel(%arg0: memref<19x256xf32, #tpu.memory_space<vmem>>, %arg1: memref<19x256xf32, #tpu.memory_space<vmem>>, %arg2: memref<19x256xf32, #tpu.memory_space<vmem>>) attributes {dimension_semantics = [], scalar_prefetch = 0 : i64, scratch_operands = 0 : i64, tpu.core_type = #tpu.core_type<tc>} {
    %c0 = arith.constant 0 : index
    %c0_0 = arith.constant 0 : index
    %0 = vector.load %arg0[%c0, %c0_0] : memref<19x256xf32, #tpu.memory_space<vmem>>, vector<19x256xf32>
    %c0_1 = arith.constant 0 : index
    %c0_2 = arith.constant 0 : index
    %1 = vector.load %arg1[%c0_1, %c0_2] : memref<19x256xf32, #tpu.memory_space<vmem>>, vector<19x256xf32>
    %2 = arith.mulf %0, %1 : vector<19x256xf32>
    %c0_3 = arith.constant 0 : index
    %c0_4 = arith.constant 0 : index
    %3 = vector.load %arg2[%c0_3, %c0_4] : memref<19x256xf32, #tpu.memory_space<vmem>>, vector<19x256xf32>
    tpu.vector_store %arg2[%c0_3, %c0_4], %2 {strides = array<i32>} : memref<19x256xf32, #tpu.memory_space<vmem>>, vector<19x256xf32>,
    return
  }
}

</mosaic_0001>

<bundles_post_ra>
// kernel: tpu_custom_call.1
= control target key start
LH: loop header
LB: loop body
LE: loop exit
PB: predicated region body
PF: predicated region fallthrough
CT: control target
= control target key end

     0   :  { %7 = vsyncpa [#allocation3], 0  ;;  %s191_s0 = inlined_call_operand.hbm [shape: f32[19,256], index: 0, kind: input, shape index: {}]   ;;  %s192_s1 = inlined_call_operand.hbm [shape: f32[19,256], index: 1, kind: input, shape index: {}]   ;;  %s193_s2 = inlined_call_operand.hbm [shape: f32[19,256], index: 2, kind: output, shape index: {}]  }
   0x1   :  { %8 = vsyncpa [#allocation6], 0 }
   0x2   :  { %9 = vsyncpa [#allocation4], 0  ;;  %s153_s9 = smov [#allocation2]  }
   0x3   :  { %s15_s10 = sshll.u32 %s153_s9, 4  ;;  %s16_s10 = int_to_ptr.vmem [resolvable:$true] %s15_s10 }
   0x4   :  { %s95_s11 = scalar_lea.vmem %s16_s10, 768  ;;  %p100_p1 = scmp.lt.s32.totalorder %s16_s10, %s16_s10 }
   0x5   :  { %p96_p0 = scmp.ne.s32.totalorder %s16_s10, %s95_s11  ;;  %p101_p2 = scmp.lt.s32.totalorder %s95_s11, %s95_s11 }
   0x7   :  { %p102_p3 = por %p101_p2, %p100_p1 }
   0x9   :  { %p103_p4 = pnand %p102_p3, %p96_p0 }
   0xb   :  { %106 = shalt.err (!%p103_p4)
}
   0xc   :  { %s154_s12 = smov 256   ;;  %s155_s13 = smov 16  }
   0xd   :  { %21 = dma.hbm_to_vmem [thread:$0]  %s191_s0, 768, %s16_s10, [#allocation3], %s154_s12, %s154_s12, %s155_s13  }
   0xe   :  { %s156_s16 = smov [#allocation5]  }
   0xf   :  { %s27_s17 = sshll.u32 %s156_s16, 4  ;;  %s28_s17 = int_to_ptr.vmem [resolvable:$true] %s27_s17 }
  0x10   :  { %s115_s18 = scalar_lea.vmem %s28_s17, 768  ;;  %p120_p6 = scmp.lt.s32.totalorder %s28_s17, %s28_s17 }
  0x11   :  { %p116_p5 = scmp.ne.s32.totalorder %s28_s17, %s115_s18  ;;  %p121_p7 = scmp.lt.s32.totalorder %s115_s18, %s115_s18 }
  0x13   :  { %p122_p8 = por %p121_p7, %p120_p6 }
  0x15   :  { %p123_p9 = pnand %p122_p8, %p116_p5 }
  0x17   :  { %126 = shalt.err (!%p123_p9)
}
  0x18   :  { %33 = dma.hbm_to_vmem [thread:$0]  %s192_s1, 768, %s28_s17, [#allocation6], %s154_s12, %s154_s12, %s155_s13  }
  0x19   :  { %147 = dma.done.wait [#allocation3], 768  }
  0x1a   :  { %148 = vsyncadd [#allocation3], 4294966528 }
  0x1b   :  { %149 = dma.done.wait [#allocation6], 768  }
  0x1c   :  { %150 = vsyncadd [#allocation6], 4294966528  ;;  %v40_v0 = vld [vmem:[#allocation2] sm:$0xff]  ;;  %v46_v1 = vld [vmem:[#allocation5] sm:$0xff]  ;;  %s157_s0 = smov [#allocation7]  }
  0x1d   :  { %v41_v2 = vld [vmem:[#allocation2 + $0x8] sm:$0xff]  ;;  %v52_v3 = vmul.f32 %v46_v1, %v40_v0  ;;  %v47_v4 = vld [vmem:[#allocation5 + $0x8] sm:$0xff]  ;;  %v42_v5 = vld [vmem:[#allocation2 + $0x10] sm:$0xff]  ;;  %s69_s21 = sshll.u32 %s157_s0, 4  ;;  %s70_s21 = int_to_ptr.vmem [resolvable:$true] %s69_s21 }
  0x1e   :  { %v48_v6 = vld [vmem:[#allocation5 + $0x10] sm:$0xff]  ;;  %v53_v7 = vmul.f32 %v47_v4, %v41_v2  ;;  %v43_v9 = vld [vmem:[#allocation2 + $0x18] sm:$0xff]  ;;  %v49_v10 = vld [vmem:[#allocation5 + $0x18] sm:$0xff]  ;;  %s127_s1 = scalar_lea.vmem %s70_s21, 768  ;;  %p132_p11 = scmp.lt.s32.totalorder %s70_s21, %s70_s21 }
  0x1f   :  { %v54_v8 = vmul.f32 %v48_v6, %v42_v5  ;;  %v44_v11 = vld [vmem:[#allocation2 + $0x20] sm:$0x7]  ;;  %58 = vst [vmem:[#allocation7] sm:$0xff] %v52_v3  ;;  %v55_v12 = vmul.f32 %v49_v10, %v43_v9  ;;  %v50_v13 = vld [vmem:[#allocation5 + $0x20] sm:$0x7]  ;;  %p128_p10 = scmp.ne.s32.totalorder %s70_s21, %s127_s1  ;;  %p133_p12 = scmp.lt.s32.totalorder %s127_s1, %s127_s1 }
  0x20   :  { %v45_v14 = vld [vmem:[#allocation2 + $0x28] sm:$0x7]  ;;  %v51_v15 = vld [vmem:[#allocation5 + $0x28] sm:$0x7]  ;;  %59 = vst [vmem:[#allocation7 + $0x8] sm:$0xff] %v53_v7  ;;  %v56_v16 = vmul.f32 %v50_v13, %v44_v11 }
  0x21   :  { %60 = vst [vmem:[#allocation7 + $0x10] sm:$0xff] %v54_v8  ;;  %v57_v17 = vmul.f32 %v51_v15, %v45_v14  ;;  %61 = vst [vmem:[#allocation7 + $0x18] sm:$0xff] %v55_v12  ;;  %p134_p13 = por %p133_p12, %p132_p11 }
  0x22   :  { %62 = vst [vmem:[#allocation7 + $0x20] sm:$0x7] %v56_v16 }
  0x23   :  { %63 = vst [vmem:[#allocation7 + $0x28] sm:$0x7] %v57_v17  ;;  %p135_p0 = pnand %p134_p13, %p128_p10 }
  0x25   :  { %138 = shalt.err (!%p135_p0)
}
  0x26   :  { %75 = dma.vmem_to_hbm [thread:$0]  %s70_s21, 768, %s193_s2, [#allocation4], %s154_s12, %s154_s12, %s155_s13  }
  0x27   :  { %151 = dma.done.wait [#allocation4], 768  }
  0x28   :  { %152 = vsyncadd [#allocation4], 4294966528 }
  0x29   :  { %79 = vsyncpa [#allocation3], 1 }
  0x2a   :  { %80 = vsyncpa [#allocation6], 1 }
  0x2b   :  { %81 = vsyncpa [#allocation4], 1 }

</bundles_post_ra>
